<compile_context>
chip_gen: v7x
topology: tpu7x:2x2x1
jax: 0.10.0
libtpu: 0.0.40
codegen_flags: <defaults>
</compile_context>

<pallas_src>
import jax
import jax.numpy as jnp
from jax.experimental import pallas as pl
from jax.experimental.pallas import tpu as pltpu


# ----------------------------------------------------------------------------
# Pallas kernel: one grid step == one batch element, full (C, HW) block.
# ----------------------------------------------------------------------------
def _make_wmff_kernel(hw_true):
    inv_hw = 1.0 / float(hw_true)

    def kernel(x_ref, r_ref,
               lw1_ref, lb1_ref, lw2_ref, lb2_ref,      # local branch (bf16 W, f32 b)
               gw1_ref, gb1_ref, gw2_ref, gb2_ref,      # global branch (f32, tiny)
               out_ref):
        x = x_ref[0].astype(jnp.float32)                # (C, HWp) f32 vregs
        r = r_ref[0].astype(jnp.float32)
        xa = x + r

        # ---- global branch (GAP -> 1x1 -> BN -> ReLU -> 1x1 -> BN), fused.
        # Padded lanes (if any) hold zeros, so sum * 1/HW_true == adaptive avg pool.
        pooled = jnp.sum(xa, axis=-1, keepdims=True) * inv_hw          # (C, 1)
        gh = jnp.dot(gw1_ref[...], pooled,
                     preferred_element_type=jnp.float32) + gb1_ref[...]
        gh = jnp.maximum(gh, 0.0)                                      # (Ci, 1)
        xg = jnp.dot(gw2_ref[...], gh,
                     preferred_element_type=jnp.float32) + gb2_ref[...]  # (C, 1)

        # ---- local branch: two 1x1 convs as (Cout,Cin)@(Cin,HW) bf16 MXU matmuls.
        xab = xa.astype(jnp.bfloat16)
        h = jnp.dot(lw1_ref[...], xab,
                    preferred_element_type=jnp.float32) + lb1_ref[...]  # (Ci, HWp)
        h = jnp.maximum(h, 0.0)
        xl = jnp.dot(lw2_ref[...], h.astype(jnp.bfloat16),
                     preferred_element_type=jnp.float32)                # (C, HWp)

        # Gate: fold the global result into the conv-2 bias -> single (C,1) add.
        z = xl + (lb2_ref[...] + xg)                                    # (C, HWp)

        # Sigmoid on the EUP: exp + approximate reciprocal (both off the VALU).
        wei = pl.reciprocal(1.0 + jnp.exp(-z), approx=True)

        # 2*x*wei + 2*r*(1-wei) == 2*(r + (x-r)*wei)
        out_ref[0] = (2.0 * (r + (x - r) * wei)).astype(out_ref.dtype)

    return kernel


# ----------------------------------------------------------------------------
# BN folding (eval mode) + pallas_call wrapper.
# ----------------------------------------------------------------------------
def fold_bn(w, b, gamma, beta, mean, var, eps=1e-5):
    """Fold eval-mode BatchNorm into a 1x1 conv with weight (Cout, Cin), bias (Cout,)."""
    scale = gamma / jnp.sqrt(var + eps)            # (Cout,)
    return w * scale[:, None], (b - mean) * scale + beta


def wmff_forward(x_nchw, res_nchw, params):
    """x, residual: (B, C, H, W) float32. Returns (B, C, H, W) bfloat16."""
    B, C, H, W = x_nchw.shape
    HW = H * W
    HWp = ((HW + 127) // 128) * 128          # keep last dim lane-aligned (mult of 128)

    lw1, lb1 = fold_bn(params["l_w1"], params["l_b1"], *params["l_bn1"])
    lw2, lb2 = fold_bn(params["l_w2"], params["l_b2"], *params["l_bn2"])
    gw1, gb1 = fold_bn(params["g_w1"], params["g_b1"], *params["g_bn1"])
    gw2, gb2 = fold_bn(params["g_w2"], params["g_b2"], *params["g_bn2"])
    Ci = lw1.shape[0]

    # Native (B, C, HW) layout (pure reshape, no NCHW<->NHWC transpose passes);
    # bf16 streams for the mem-bound reads/writes.
    x = x_nchw.reshape(B, C, HW).astype(jnp.bfloat16)
    r = res_nchw.reshape(B, C, HW).astype(jnp.bfloat16)
    if HWp != HW:
        pad = ((0, 0), (0, 0), (0, HWp - HW))
        x = jnp.pad(x, pad)
        r = jnp.pad(r, pad)

    # Local conv weights as bf16 (native MXU path); biases + tiny global branch in f32.
    lw1b = lw1.astype(jnp.bfloat16)
    lw2b = lw2.astype(jnp.bfloat16)
    lb1c = lb1.reshape(Ci, 1).astype(jnp.float32)
    lb2c = lb2.reshape(C, 1).astype(jnp.float32)
    gw1f = gw1.astype(jnp.float32)
    gw2f = gw2.astype(jnp.float32)
    gb1c = gb1.reshape(Ci, 1).astype(jnp.float32)
    gb2c = gb2.reshape(C, 1).astype(jnp.float32)

    # VMEM budget: (2 inputs + 1 output) x 2 buffers x one (C, HWp) bf16 block + weights.
    block_bytes = C * HWp * 2
    weight_bytes = ((lw1b.size + lw2b.size) * 2 + (gw1f.size + gw2f.size) * 4
                    + (lb1c.size + lb2c.size + gb1c.size + gb2c.size) * 4)
    vmem_need = 3 * 2 * block_bytes + 2 * weight_bytes + (1 << 20)
    # Cap well under v7x's 64 MiB VMEM; also fine on v5e/v6e (raises the low defaults).
    vmem_limit = int(min(max(2 * vmem_need, 16 << 20), 40 << 20))
    # TODO(synk): if a single (C, HWp) block ever exceeds this budget (very large
    # C*HW), add an HW grid axis with a GAP precursor instead of the fused path.

    act_spec = pl.BlockSpec((1, C, HWp), lambda b: (b, 0, 0))

    def const(shape):
        return pl.BlockSpec(shape, lambda b: (0,) * len(shape))

    out = pl.pallas_call(
        _make_wmff_kernel(HW),
        out_shape=jax.ShapeDtypeStruct((B, C, HWp), jnp.bfloat16),
        grid_spec=pltpu.PrefetchScalarGridSpec(
            num_scalar_prefetch=0,
            grid=(B,),
            in_specs=[
                act_spec, act_spec,
                const((Ci, C)), const((Ci, 1)),
                const((C, Ci)), const((C, 1)),
                const((Ci, C)), const((Ci, 1)),
                const((C, Ci)), const((C, 1)),
            ],
            out_specs=act_spec,
        ),
        compiler_params=pltpu.CompilerParams(
            dimension_semantics=("parallel",),
            vmem_limit_bytes=vmem_limit),
    )(x, r, lw1b, lb1c, lw2b, lb2c, gw1f, gb1c, gw2f, gb2c)

    if HWp != HW:
        out = out[..., :HW]
    return out.reshape(B, C, H, W)


# ----------------------------------------------------------------------------
# Pure-JAX f32 reference (same eval-mode BN folding / gate algebra).
# ----------------------------------------------------------------------------
def wmff_reference(x_nchw, res_nchw, params):
    B, C, H, W = x_nchw.shape
    x = x_nchw.reshape(B, C, -1)
    r = res_nchw.reshape(B, C, -1)
    xa = x + r

    lw1, lb1 = fold_bn(params["l_w1"], params["l_b1"], *params["l_bn1"])
    lw2, lb2 = fold_bn(params["l_w2"], params["l_b2"], *params["l_bn2"])
    gw1, gb1 = fold_bn(params["g_w1"], params["g_b1"], *params["g_bn1"])
    gw2, gb2 = fold_bn(params["g_w2"], params["g_b2"], *params["g_bn2"])

    xl = jnp.einsum("oc,bch->boh", lw1, xa) + lb1[None, :, None]
    xl = jnp.maximum(xl, 0.0)
    xl = jnp.einsum("oi,bih->boh", lw2, xl) + lb2[None, :, None]

    pooled = jnp.mean(xa, axis=-1)                          # (B, C)
    g = jnp.maximum(pooled @ gw1.T + gb1, 0.0)
    xg = (g @ gw2.T + gb2)[..., None]                       # (B, C, 1)

    wei = jax.nn.sigmoid(xl + xg)
    out = 2.0 * x * wei + 2.0 * r * (1.0 - wei)
    return out.reshape(B, C, H, W)


# ----------------------------------------------------------------------------
# Deterministic parameter init (synthetic; eval-mode BN with nontrivial stats).
# Conv weights are stored PyTorch-style: (out_channels, in_channels).
# ----------------------------------------------------------------------------
def make_params(key, channels, r):
    inter = channels // r
    ks = jax.random.split(key, 16)

    def conv_w(k, cout, cin):
        return 0.1 * jax.random.normal(k, (cout, cin), jnp.float32)

    def bn_stats(k, c):
        kg, kb, km, kv = jax.random.split(k, 4)
        gamma = 1.0 + 0.1 * jax.random.normal(kg, (c,), jnp.float32)
        beta = 0.1 * jax.random.normal(kb, (c,), jnp.float32)
        mean = 0.1 * jax.random.normal(km, (c,), jnp.float32)
        var = jnp.abs(1.0 + 0.1 * jax.random.normal(kv, (c,), jnp.float32))
        return (gamma, beta, mean, var)

    return {
        "l_w1": conv_w(ks[0], inter, channels),
        "l_b1": 0.05 * jax.random.normal(ks[1], (inter,), jnp.float32),
        "l_bn1": bn_stats(ks[2], inter),
        "l_w2": conv_w(ks[3], channels, inter),
        "l_b2": 0.05 * jax.random.normal(ks[4], (channels,), jnp.float32),
        "l_bn2": bn_stats(ks[5], channels),
        "g_w1": conv_w(ks[6], inter, channels),
        "g_b1": 0.05 * jax.random.normal(ks[7], (inter,), jnp.float32),
        "g_bn1": bn_stats(ks[8], inter),
        "g_w2": conv_w(ks[9], channels, inter),
        "g_b2": 0.05 * jax.random.normal(ks[10], (channels,), jnp.float32),
        "g_bn2": bn_stats(ks[11], channels),
    }


if __name__ == "__main__":
    # TODO(synk): BatchNorm is implemented in eval mode (running stats folded
    # into the 1x1 convs); PyTorch training-mode batch statistics are not
    # reproduced.
    B, C, H, W = 2, 32, 16, 16
    r = 4

    key = jax.random.PRNGKey(0)
    kx, kr, kp = jax.random.split(key, 3)
    x = jax.random.normal(kx, (B, C, H, W), jnp.float32)
    residual = jax.random.normal(kr, (B, C, H, W), jnp.float32)
    params = make_params(kp, C, r)

    out = jax.block_until_ready(wmff_forward(x, residual, params))

    # The kernel intentionally streams x/residual in bf16; quantize the reference
    # inputs identically and use a tolerance sized for bf16 I/O + approx reciprocal.
    xq = x.astype(jnp.bfloat16).astype(jnp.float32)
    rq = residual.astype(jnp.bfloat16).astype(jnp.float32)
    ref = wmff_reference(xq, rq, params)

    assert out.shape == (B, C, H, W)
    assert out.dtype == jnp.bfloat16
    assert jnp.allclose(out.astype(jnp.float32), ref, atol=5e-2, rtol=5e-2), \
        "mismatch vs reference"

    print("KERNEL_OK")
</pallas_src>

<mosaic_0001>
module attributes {stable_mosaic.version = 11 : i64} {
  func.func @kernel(%arg0: i32, %arg1: memref<1x32x256xbf16, #tpu.memory_space<vmem>>, %arg2: memref<1x32x256xbf16, #tpu.memory_space<vmem>>, %arg3: memref<8x32xbf16, #tpu.memory_space<vmem>>, %arg4: memref<8x1xf32, #tpu.memory_space<vmem>>, %arg5: memref<32x8xbf16, #tpu.memory_space<vmem>>, %arg6: memref<32x1xf32, #tpu.memory_space<vmem>>, %arg7: memref<8x32xf32, #tpu.memory_space<vmem>>, %arg8: memref<8x1xf32, #tpu.memory_space<vmem>>, %arg9: memref<32x8xf32, #tpu.memory_space<vmem>>, %arg10: memref<32x1xf32, #tpu.memory_space<vmem>>, %arg11: memref<1x32x256xbf16, #tpu.memory_space<vmem>>) attributes {dimension_semantics = [#tpu.dimension_semantics<parallel>], iteration_bounds = array<i64: 2>, scalar_prefetch = 0 : i64, scratch_operands = 0 : i64, tpu.core_type = #tpu.core_type<tc>, window_params = [{transform_indices = @transform_0, window_bounds = array<i64: 1, 32, 256>}, {transform_indices = @transform_1, window_bounds = array<i64: 1, 32, 256>}, {pipeline_mode = #tpu.pipeline_mode<synchronous>, transform_indices = @transform_2, window_bounds = array<i64: 8, 32>}, {pipeline_mode = #tpu.pipeline_mode<synchronous>, transform_indices = @transform_3, window_bounds = array<i64: 8, 1>}, {pipeline_mode = #tpu.pipeline_mode<synchronous>, transform_indices = @transform_4, window_bounds = array<i64: 32, 8>}, {pipeline_mode = #tpu.pipeline_mode<synchronous>, transform_indices = @transform_5, window_bounds = array<i64: 32, 1>}, {pipeline_mode = #tpu.pipeline_mode<synchronous>, transform_indices = @transform_6, window_bounds = array<i64: 8, 32>}, {pipeline_mode = #tpu.pipeline_mode<synchronous>, transform_indices = @transform_7, window_bounds = array<i64: 8, 1>}, {pipeline_mode = #tpu.pipeline_mode<synchronous>, transform_indices = @transform_8, window_bounds = array<i64: 32, 8>}, {pipeline_mode = #tpu.pipeline_mode<synchronous>, transform_indices = @transform_9, window_bounds = array<i64: 32, 1>}, {transform_indices = @transform_10, window_bounds = array<i64: 1, 32, 256>}]} {
    %c0 = arith.constant 0 : index
    %c0_0 = arith.constant 0 : index
    %c0_1 = arith.constant 0 : index
    %0 = vector.load %arg1[%c0, %c0_0, %c0_1] : memref<1x32x256xbf16, #tpu.memory_space<vmem>>, vector<1x32x256xbf16>
    %1 = vector.shape_cast %0 : vector<1x32x256xbf16> to vector<32x256xbf16>
    %2 = arith.extf %1 : vector<32x256xbf16> to vector<32x256xf32>
    %c0_2 = arith.constant 0 : index
    %c0_3 = arith.constant 0 : index
    %c0_4 = arith.constant 0 : index
    %3 = vector.load %arg2[%c0_2, %c0_3, %c0_4] : memref<1x32x256xbf16, #tpu.memory_space<vmem>>, vector<1x32x256xbf16>
    %4 = vector.shape_cast %3 : vector<1x32x256xbf16> to vector<32x256xbf16>
    %5 = arith.extf %4 : vector<32x256xbf16> to vector<32x256xf32>
    %6 = arith.addf %2, %5 : vector<32x256xf32>
    %cst = arith.constant dense<0.000000e+00> : vector<32xf32>
    %7 = vector.multi_reduction <add>, %6, %cst [1] : vector<32x256xf32> to vector<32xf32>
    %8 = vector.shape_cast %7 : vector<32xf32> to vector<32x1xf32>
    %cst_5 = arith.constant 3.906250e-03 : f32
    %9 = vector.broadcast %cst_5 : f32 to vector<32x1xf32>
    %10 = arith.mulf %8, %9 : vector<32x1xf32>
    %c0_6 = arith.constant 0 : index
    %c0_7 = arith.constant 0 : index
    %11 = vector.load %arg7[%c0_6, %c0_7] : memref<8x32xf32, #tpu.memory_space<vmem>>, vector<8x32xf32>
    %cst_8 = arith.constant dense<0.000000e+00> : vector<8x1xf32>
    %12 = tpu.matmul %11, %10, %cst_8 {dimension_numbers = #tpu.dot_dimension_numbers<[1], [0], [0], [1], [0, 0, 1, 1], [], []>} : vector<8x32xf32>, vector<32x1xf32>, vector<8x1xf32> -> vector<8x1xf32>
    %c0_9 = arith.constant 0 : index
    %c0_10 = arith.constant 0 : index
    %13 = vector.load %arg8[%c0_9, %c0_10] : memref<8x1xf32, #tpu.memory_space<vmem>>, vector<8x1xf32>
    %14 = arith.addf %12, %13 : vector<8x1xf32>
    %cst_11 = arith.constant 0.000000e+00 : f32
    %15 = vector.broadcast %cst_11 : f32 to vector<8x1xf32>
    %16 = arith.maximumf %14, %15 : vector<8x1xf32>
    %c0_12 = arith.constant 0 : index
    %c0_13 = arith.constant 0 : index
    %17 = vector.load %arg9[%c0_12, %c0_13] : memref<32x8xf32, #tpu.memory_space<vmem>>, vector<32x8xf32>
    %cst_14 = arith.constant dense<0.000000e+00> : vector<32x1xf32>
    %18 = tpu.matmul %17, %16, %cst_14 {dimension_numbers = #tpu.dot_dimension_numbers<[1], [0], [0], [1], [0, 0, 1, 1], [], []>} : vector<32x8xf32>, vector<8x1xf32>, vector<32x1xf32> -> vector<32x1xf32>
    %c0_15 = arith.constant 0 : index
    %c0_16 = arith.constant 0 : index
    %19 = vector.load %arg10[%c0_15, %c0_16] : memref<32x1xf32, #tpu.memory_space<vmem>>, vector<32x1xf32>
    %20 = arith.addf %18, %19 : vector<32x1xf32>
    %21 = arith.truncf %6 : vector<32x256xf32> to vector<32x256xbf16>
    %c0_17 = arith.constant 0 : index
    %c0_18 = arith.constant 0 : index
    %22 = vector.load %arg3[%c0_17, %c0_18] : memref<8x32xbf16, #tpu.memory_space<vmem>>, vector<8x32xbf16>
    %cst_19 = arith.constant dense<0.000000e+00> : vector<8x256xf32>
    %23 = tpu.matmul %22, %21, %cst_19 {dimension_numbers = #tpu.dot_dimension_numbers<[1], [0], [0], [1], [0, 0, 1, 1], [], []>} : vector<8x32xbf16>, vector<32x256xbf16>, vector<8x256xf32> -> vector<8x256xf32>
    %c0_20 = arith.constant 0 : index
    %c0_21 = arith.constant 0 : index
    %24 = vector.load %arg4[%c0_20, %c0_21] : memref<8x1xf32, #tpu.memory_space<vmem>>, vector<8x1xf32>
    %25 = vector.broadcast %24 : vector<8x1xf32> to vector<8x256xf32>
    %26 = arith.addf %23, %25 : vector<8x256xf32>
    %cst_22 = arith.constant 0.000000e+00 : f32
    %27 = vector.broadcast %cst_22 : f32 to vector<8x256xf32>
    %28 = arith.maximumf %26, %27 : vector<8x256xf32>
    %c0_23 = arith.constant 0 : index
    %c0_24 = arith.constant 0 : index
    %29 = vector.load %arg5[%c0_23, %c0_24] : memref<32x8xbf16, #tpu.memory_space<vmem>>, vector<32x8xbf16>
    %30 = arith.truncf %28 : vector<8x256xf32> to vector<8x256xbf16>
    %cst_25 = arith.constant dense<0.000000e+00> : vector<32x256xf32>
    %31 = tpu.matmul %29, %30, %cst_25 {dimension_numbers = #tpu.dot_dimension_numbers<[1], [0], [0], [1], [0, 0, 1, 1], [], []>} : vector<32x8xbf16>, vector<8x256xbf16>, vector<32x256xf32> -> vector<32x256xf32>
    %c0_26 = arith.constant 0 : index
    %c0_27 = arith.constant 0 : index
    %32 = vector.load %arg6[%c0_26, %c0_27] : memref<32x1xf32, #tpu.memory_space<vmem>>, vector<32x1xf32>
    %33 = arith.addf %32, %20 : vector<32x1xf32>
    %34 = vector.broadcast %33 : vector<32x1xf32> to vector<32x256xf32>
    %35 = arith.addf %31, %34 : vector<32x256xf32>
    %cst_28 = arith.constant 0.000000e+00 : f32
    %36 = vector.broadcast %cst_28 : f32 to vector<32x256xf32>
    %37 = arith.subf %36, %35 : vector<32x256xf32>
    %38 = math.exp %37 : vector<32x256xf32>
    %cst_29 = arith.constant 1.000000e+00 : f32
    %39 = vector.broadcast %cst_29 : f32 to vector<32x256xf32>
    %40 = arith.addf %39, %38 : vector<32x256xf32>
    %41 = tpu.reciprocal %40 {approx = true} : vector<32x256xf32> -> vector<32x256xf32>
    %42 = arith.subf %2, %5 : vector<32x256xf32>
    %43 = arith.mulf %42, %41 : vector<32x256xf32>
    %44 = arith.addf %5, %43 : vector<32x256xf32>
    %cst_30 = arith.constant 2.000000e+00 : f32
    %45 = vector.broadcast %cst_30 : f32 to vector<32x256xf32>
    %46 = arith.mulf %45, %44 : vector<32x256xf32>
    %47 = arith.truncf %46 : vector<32x256xf32> to vector<32x256xbf16>
    %c0_31 = arith.constant 0 : index
    %c0_32 = arith.constant 0 : index
    %c0_33 = arith.constant 0 : index
    %48 = vector.load %arg11[%c0_31, %c0_32, %c0_33] : memref<1x32x256xbf16, #tpu.memory_space<vmem>>, vector<1x32x256xbf16>
    %49 = vector.shape_cast %48 : vector<1x32x256xbf16> to vector<32x256xbf16>
    %50 = vector.shape_cast %47 : vector<32x256xbf16> to vector<1x32x256xbf16>
    tpu.vector_store %arg11[%c0_31, %c0_32, %c0_33], %50 {strides = array<i32>} : memref<1x32x256xbf16, #tpu.memory_space<vmem>>, vector<1x32x256xbf16>,
    return
  }
  func.func @transform_0(%arg0: i32) -> (i32, i32, i32) {
    %c0_i32 = arith.constant 0 : i32
    %c0_i32_0 = arith.constant 0 : i32
    %c0_i32_1 = arith.constant 0 : i32
    return %arg0, %c0_i32, %c0_i32_0 : i32, i32, i32
  }
  func.func @transform_1(%arg0: i32) -> (i32, i32, i32) {
    %c0_i32 = arith.constant 0 : i32
    %c0_i32_0 = arith.constant 0 : i32
    %c0_i32_1 = arith.constant 0 : i32
    return %arg0, %c0_i32, %c0_i32_0 : i32, i32, i32
  }
  func.func @transform_2(%arg0: i32) -> (i32, i32) {
    %c0_i32 = arith.constant 0 : i32
    %c0_i32_0 = arith.constant 0 : i32
    %c0_i32_1 = arith.constant 0 : i32
    return %c0_i32, %c0_i32_0 : i32, i32
  }
  func.func @transform_3(%arg0: i32) -> (i32, i32) {
    %c0_i32 = arith.constant 0 : i32
    %c0_i32_0 = arith.constant 0 : i32
    %c0_i32_1 = arith.constant 0 : i32
    return %c0_i32, %c0_i32_0 : i32, i32
  }
  func.func @transform_4(%arg0: i32) -> (i32, i32) {
    %c0_i32 = arith.constant 0 : i32
    %c0_i32_0 = arith.constant 0 : i32
    %c0_i32_1 = arith.constant 0 : i32
    return %c0_i32, %c0_i32_0 : i32, i32
  }
  func.func @transform_5(%arg0: i32) -> (i32, i32) {
    %c0_i32 = arith.constant 0 : i32
    %c0_i32_0 = arith.constant 0 : i32
    %c0_i32_1 = arith.constant 0 : i32
    return %c0_i32, %c0_i32_0 : i32, i32
  }
  func.func @transform_6(%arg0: i32) -> (i32, i32) {
    %c0_i32 = arith.constant 0 : i32
    %c0_i32_0 = arith.constant 0 : i32
    %c0_i32_1 = arith.constant 0 : i32
    return %c0_i32, %c0_i32_0 : i32, i32
  }
  func.func @transform_7(%arg0: i32) -> (i32, i32) {
    %c0_i32 = arith.constant 0 : i32
    %c0_i32_0 = arith.constant 0 : i32
    %c0_i32_1 = arith.constant 0 : i32
    return %c0_i32, %c0_i32_0 : i32, i32
  }
  func.func @transform_8(%arg0: i32) -> (i32, i32) {
    %c0_i32 = arith.constant 0 : i32
    %c0_i32_0 = arith.constant 0 : i32
    %c0_i32_1 = arith.constant 0 : i32
    return %c0_i32, %c0_i32_0 : i32, i32
  }
  func.func @transform_9(%arg0: i32) -> (i32, i32) {
    %c0_i32 = arith.constant 0 : i32
    %c0_i32_0 = arith.constant 0 : i32
    %c0_i32_1 = arith.constant 0 : i32
    return %c0_i32, %c0_i32_0 : i32, i32
  }
  func.func @transform_10(%arg0: i32) -> (i32, i32, i32) {
    %c0_i32 = arith.constant 0 : i32
    %c0_i32_0 = arith.constant 0 : i32
    %c0_i32_1 = arith.constant 0 : i32
    return %arg0, %c0_i32, %c0_i32_0 : i32, i32, i32
  }
}

</mosaic_0001>

<bundles_post_ra>
// kernel: tpu_custom_call.1
= control target key start
LH: loop header
LB: loop body
LE: loop exit
PB: predicated region body
PF: predicated region fallthrough
CT: control target
= control target key end

     0   :  { %15 = vsyncpa [#allocation3], 0  ;;  %s1521_s0 = inlined_call_operand.vmem [shape: bf16[2,32,256], index: 0, kind: input, shape index: {}]   ;;  %s1522_s1 = inlined_call_operand.vmem [shape: bf16[2,32,256], index: 1, kind: input, shape index: {}]   ;;  %s1523_s2 = inlined_call_operand.vmem [shape: bf16[8,32], index: 2, kind: input, shape index: {}]   ;;  %s1524_s3 = inlined_call_operand.vmem [shape: f32[8,1], index: 3, kind: input, shape index: {}]   ;;  %s1525_s4 = inlined_call_operand.vmem [shape: bf16[32,8], index: 4, kind: input, shape index: {}]   ;;  %s1526_s5 = inlined_call_operand.vmem [shape: f32[32,1], index: 5, kind: input, shape index: {}]   ;;  %s1527_s6 = inlined_call_operand.vmem [shape: f32[8,32], index: 6, kind: input, shape index: {}]   ;;  %s1528_s7 = inlined_call_operand.vmem [shape: f32[8,1], index: 7, kind: input, shape index: {}]   ;;  %s1529_s8 = inlined_call_operand.vmem [shape: f32[32,8], index: 8, kind: input, shape index: {}]   ;;  %s1530_s9 = inlined_call_operand.vmem [shape: f32[32,1], index: 9, kind: input, shape index: {}]   ;;  %s1531_s10 = inlined_call_operand.hbm [shape: bf16[2,32,256], index: 10, kind: output, shape index: {}]  }
   0x1   :  { %17 = vsyncpa [#allocation3 + $0x1], 0  ;;  %s1245_s13 = smov 0   ;;  %s1247_s14 = smov 0  }
   0x2   :  { %s1249_s15 = smov 0   ;;  %s1251_s16 = smov 0  }
   0x3 LB: > { %s1266_s17 = sadd.s32 4294967295, %s1181_s16   ;;  %s965_s18 = sadd.s32 4294967294, %s1181_s16   ;;  %s1181_s16 = sphi %s1251_s16, %s1537_s16   ;;  %s1177_s15 = sphi %s1249_s15, %s1536_s15   ;;  %s1173_s14 = sphi %s1247_s14, %s1535_s14   ;;  %s1169_s13 = sphi %s1245_s13, %s1534_s13  }
   0x4   : > { %s1270_s19 = sadd.s32 1, %s1181_s16   ;;  %s250_s20 = sadd.s32 1, %s1177_s15 }
   0x5   : > { %s247_s21 = ssub.s32 %s1181_s16, %s1270_s19  ;;  %p260_p0 = scmp.ne.s32.totalorder %s1177_s15, %s1173_s14 }
   0x6   : > { %p248_p1 = scmp.eq.s32.totalorder %s247_s21, 0  ;;  %p261_p2 = scmp.eq.s32.totalorder %s1266_s17, 1 }
   0x7   : > { %p266_p3 = scmp.ne.s32.totalorder %s1173_s14, %s1169_s13  ;;  %p267_p4 = scmp.eq.s32.totalorder %s965_s18, 1 }
   0x8   : > { %s1281_s22 = scalar_select %p248_p1, %s1177_s15, %s250_s20  }
   0x9   : > { %p1283_p5 = por %p261_p2, %p260_p0  ;;  %p1287_p6 = por %p267_p4, %p266_p3 }
   0xa   : > { %p968_p7 = scmp.ge.s32.totalorder %s1181_s16, 1  ;;  %p325_p8 = scmp.lt.s32.totalorder %s1181_s16, 3 }
   0xc   : > { %p326_p9 = pnand %p968_p7, %p325_p8 }
   0xd   : > { %p368_p10 = scmp.lt.s32.totalorder (!%p326_p9), %s1266_s17, 1  ;;  %v1183_v38 = vmov (!%p326_p9), 0.0|0.0   ;;  %vm1184_vm0 = vmmov (!%p326_p9), 0   ;;  %v1185_v39 = vmov (!%p326_p9), 0.0   ;;  %v427_v50 = vld [vmem:[%s1527_s6] sm:$0xff] (!%p326_p9)  ;;  %vm429_vm1 = vcmask (!%p326_p9), 261120  }
   0xe   : > { %329 = sbr.rel (%p326_p9) target bundleno = 911 (0x38f), region = 60  ;;  %1030 = vmatprep.subr.bf16.mxu0 (!%p326_p9), %v1183_v38  ;;  %1019 = vmatprep.mubr.msk.f32.mxu0 (!%p326_p9), %vm1184_vm0, %v1185_v39  ;;  %v504_v51 = vld [vmem:[%s1529_s8] sm:$0xff] (!%p326_p9)  ;;  %vm512_vm2 = vcmask (!%p326_p9), 64512   ;;  %v1186_v52 = vmov (!%p326_p9), 0   ;;  %v505_v60 = vld [vmem:[%s1529_s8 + $0x8] sm:$0xff] (!%p326_p9)  ;;  %v506_v61 = vld [vmem:[%s1529_s8 + $0x10] sm:$0xff] (!%p326_p9) }
   0xf   : > { %1024 = vmatprep.mubr.msk.f32.mxu1 (!%p326_p9), %vm512_vm2, %v504_v51  ;;  %1083 = vset.pattern.permute.xlu0 (!%p326_p9), %v1186_v52  ;;  %v615_v53 = vld [vmem:[%s1524_s3] sm:$0xff] (!%p326_p9)  ;;  %v507_v63 = vld [vmem:[%s1529_s8 + $0x18] sm:$0xff] (!%p326_p9)  ;;  %vm717_vm3 = vcmask (!%p326_p9), 1043456   ;;  %s1000_s27 = sshll.u32 (!%p326_p9), %s1266_s17, 9  ;;  %s1187_s20 = smov (!%p326_p9), [#allocation2]  }
  0x10   : > { %1084 = vset.pattern.permute.xlu1 (!%p326_p9), %v1186_v52  ;;  %v428_v54 = vld [vmem:[%s1528_s7] sm:$0xff] (!%p326_p9)  ;;  %s1123_s21 = sshll.u32 (!%p326_p9), %s1187_s20, 4  ;;  %s1124_s21 = int_to_ptr.vmem [resolvable:$false] %s1123_s21 }
  0x15   : > { %s369_s25 = scalar_select %p368_p10, %s1266_s17, 1 }
  0x17   : > { %s994_s26 = sshll.u32 %s369_s25, 5  ;;  %s365_s25 = sand.u32 1, %s1173_s14  }
  0x18   : > { %s372_s29 = scalar_lea.vmem %s1521_s0, %s994_s26  ;;  %s377_s12 = scalar_lea.vmem %s1522_s1, %s994_s26 }
  0x19   : > { %v1301_v0 = vld [vmem:[%s372_s29 + $0x10] sm:$0xff]  ;;  %v1303_v2 = vld [vmem:[%s372_s29] sm:$0xff]  ;;  %v1317_v12 = vld [vmem:[%s372_s29 + $0x18] sm:$0xff]  ;;  %s969_s26 = sshll.u32 %s365_s25, 5  ;;  %s1480_s17 = scalar_lea.sflag [#allocation3], %s365_s25 }
  0x1a   : > { %v393_v1 = vld [vmem:[%s377_s12 + $0x10] sm:$0xff]  ;;  %v387_v3 = vunpack.c.l.bf16 %v1301_v0  ;;  %v388_v4 = vunpack.c.h.bf16 %v1301_v0  ;;  %v391_v7 = vld [vmem:[%s377_s12] sm:$0xff]  ;;  %v383_v8 = vunpack.c.l.bf16 %v1303_v2  ;;  %v384_v9 = vunpack.c.h.bf16 %v1303_v2  ;;  %v394_v13 = vld [vmem:[%s377_s12 + $0x18] sm:$0xff]  ;;  %s367_s28 = scalar_lea.vmem [#allocation2], %s969_s26  ;;  %s1125_s26 = scalar_lea.vmem %s1124_s21, 1024 }
  0x1b   : > { %v1307_v5 = vunpack.c.l.bf16 %v393_v1  ;;  %v1309_v6 = vunpack.c.h.bf16 %v393_v1  ;;  %v1313_v10 = vunpack.c.l.bf16 %v391_v7  ;;  %v1315_v11 = vunpack.c.h.bf16 %v391_v7  ;;  %v1329_v16 = vld [vmem:[%s372_s29 + $0x8] sm:$0xff]  ;;  %v614_v1 = vld [vmem:[%s1523_s2] sm:$0xf]  ;;  %s891_s29 = sshll.u32 %s367_s28, 4  ;;  %s1476_s29 = int_to_ptr.vmem [resolvable:$true] %s891_s29 }
  0x1c   : > { %v392_v19 = vld [vmem:[%s377_s12 + $0x8] sm:$0xff]  ;;  %v389_v21 = vunpack.c.l.bf16 %v1317_v12  ;;  %v390_v22 = vunpack.c.h.bf16 %v1317_v12  ;;  %v1345_v23 = vunpack.c.l.bf16 %v394_v13  ;;  %v1349_v25 = vunpack.c.h.bf16 %v394_v13  ;;  %s1474_s12 = scalar_lea.hbm %s1531_s10, %s1000_s27  ;;  %s1119_s18 = scalar_lea.vmem %s1476_s29, 512 }
  0x1d   : > { %v1322_v14 = vadd.f32 %v1307_v5, %v387_v3  ;;  %v1327_v15 = vadd.f32 %v1309_v6, %v388_v4  ;;  %v1334_v17 = vadd.f32 %v1313_v10, %v383_v8  ;;  %v1339_v18 = vadd.f32 %v1315_v11, %v384_v9  ;;  %v509_v7 = vld [vmem:[%s1530_s9 + $0x8] sm:$0xff]  ;;  %p1120_p11 = scmp.ne.s32.totalorder %s1476_s29, %s1119_s18  ;;  %p1126_p0 = scmp.lt.s32.totalorder %s1476_s29, %s1124_s21 }
  0x1e   : > { %v385_v26 = vunpack.c.l.bf16 %v1329_v16  ;;  %v386_v27 = vunpack.c.h.bf16 %v1329_v16  ;;  %v409_v28 = vadd.f32 %v1345_v23, %v389_v21  ;;  %v1356_v29 = vunpack.c.l.bf16 %v392_v19  ;;  %p1127_p1 = scmp.lt.s32.totalorder %s1125_s26, %s1119_s18 }
  0x1f   : > { %v417_v20 = vadd.f32 %v1327_v15, %v1322_v14  ;;  %v411_v24 = vadd.f32 %v1339_v18, %v1334_v17  ;;  %v1358_v30 = vunpack.c.h.bf16 %v392_v19  ;;  %v410_v31 = vadd.f32 %v1349_v25, %v390_v22  ;;  %p1121_p12 = pnand %p1120_p11, %p1283_p5 }
  0x20   : > { %v612_v32 = vpack.c.bf16 %v409_v28, %v1322_v14  ;;  %v405_v33 = vadd.f32 %v1356_v29, %v385_v26  ;;  %v674_v14 = vld [vmem:[%s1526_s5 + $0x8] sm:$0xff]  ;;  %p1128_p2 = por %p1127_p1, %p1126_p0 }
  0x21   : > { %418 = vadd.xlane.f32.xlu1 %v417_v20  ;;  %412 = vadd.xlane.f32.xlu0 %v411_v24  ;;  %v406_v34 = vadd.f32 %v1358_v30, %v386_v27  ;;  %v420_v35 = vadd.f32 %v410_v31, %v409_v28  ;;  %v613_v62 = vpack.c.bf16 %v410_v31, %v1327_v15  ;;  %v508_v15 = vld [vmem:[%s1530_s9] sm:$0xff]  ;;  %v510_v31 = vld [vmem:[%s1530_s9 + $0x10] sm:$0xff]  ;;  %p1122_p13 = pneg %p1121_p12 }
  0x22   : > { %v610_v37 = vpack.c.bf16 %v405_v33, %v1334_v17  ;;  %v673_v24 = vld [vmem:[%s1526_s5] sm:$0xff]  ;;  %v820_v0 = vsub.f32 %v386_v27, %v1358_v30 }
  0x23   : > { %v414_v36 = vadd.f32 %v406_v34, %v405_v33  ;;  %v611_v59 = vpack.c.bf16 %v406_v34, %v1339_v18  ;;  %p1129_p3 = pnand %p1128_p2, %p1122_p13 }
  0x25   : > { %421 = vadd.xlane.f32.xlu1 %v420_v35  ;;  %415 = vadd.xlane.f32.xlu0 %v414_v36  ;;  %v511_v36 = vld [vmem:[%s1530_s9 + $0x18] sm:$0xff] }
  0x3b   : > { %618 = vperm.xlu0 %1083, %v615_v53   ;;  %v1085_v53 = vld [vmem:[%s1525_s4] sm:$0xff]  }
  0xae   : > { %v419_v40 = vpop.xlane.xlu1 %418  ;;  %v413_v41 = vpop.xlane.xlu0 %412 }
  0xaf   : > { %v423_v44 = vmul.f32 0.00390625, %v413_v41  ;;  %v425_v46 = vmul.f32 0.00390625, %v419_v40 }
  0xb2   : > { %v422_v42 = vpop.xlane.xlu1 %421  ;;  %v416_v43 = vpop.xlane.xlu0 %415 }
  0xb3   : > { %v424_v45 = vmul.f32 0.00390625, %v416_v43  ;;  %v426_v47 = vmul.f32 0.00390625, %v422_v42 }
  0xb5   : > { %v1031_v48 = vpack.c.bf16 %v424_v45, %v423_v44  ;;  %v1034_v49 = vpack.c.bf16 %v426_v47, %v425_v46  ;;  %v676_v47 = vld [vmem:[%s1526_s5 + $0x18] sm:$0xff] }
  0xb7   : > { %1032 = vmatpush3.bf16.msra.mxu0 %v1031_v48 }
  0xb8   : > { %1033 = vmatprep.subr.bf16.mxu0 %v1183_v38 }
  0xba   : > { %v619_v33 = vpop.permute.xlu0 %618 }
  0xbb   : > { %1035 = vmatpush3.bf16.msra.mxu0 %v1034_v49 }
  0xbe   : > { %1020 = vmatmul.mubr.msk.f32.vlgmr.msra.gmra.mrb[0].mxu0 %vm429_vm1, %v427_v50 }
  0xbf   : > { %756 = vmatprep.mubr.bf16.mxu0 %v1186_v52 }
 0x191   : > { %v499_v55 = vpop.f32.mrb[0].mxu0 }
 0x192   : > { %v500_v56 = vadd.f32 %v499_v55, %v428_v54  ;;  %v1021_v57 = vpop.f32.mrb[1].mxu0  ;;  %v1086_v54 = vld [vmem:[%s1525_s4 + $0x8] sm:$0xff]  }
 0x194   : > { %v503_v58 = vmax.f32 %v500_v56, 0.0 }
 0x196   : > { %1022 = vmatprep.subr.mxu1 %v503_v58 }
 0x197   : > { %1023 = vmatpush3.msra.mxu1 %v503_v58 }
 0x198   : > { %1025 = vmatmul.mubr.msk.f32.vlgmr.msra.gmra.mrb[0].mxu1 %vm512_vm2, %v505_v60  ;;  %624 = vmatprep.subr.bf16.mxu1 %v611_v59 }
 0x199   : > { %625 = vmatpush1.bf16.msra.mxu1 %v610_v37  ;;  %1027 = vmatprep.mubr.msk.f32.mxu1 %vm512_vm2, %v506_v61  ;;  %v675_v37 = vld [vmem:[%s1526_s5 + $0x10] sm:$0xff] }
 0x19a   : > { %626 = vmatprep.subr.bf16.mxu1 %v613_v62 }
 0x19c   : > { %1028 = vmatmul.mubr.msk.f32.gmra.mrb[2].mxu1 %vm512_vm2, %v507_v63 }
 0x19d   : > { %627 = vmatpush1.bf16.msra.mxu1 %v612_v32  ;;  %656 = vmatprep.mubr.bf16.mxu1 %v1186_v52 }
 0x1a0   : > { %979 = vmatmul.mubr.msk.bf16.vlgmr.msra.gmra.mrb[4].mxu1 %vm429_vm1, %v614_v1 }
 0x1a1   : > { %766 = vmatprep.mubr.bf16.mxu1 %v1186_v52 }
 0x26b   : > { %v1026_v13 = vpop.f32.mrb[0].mxu1 }
 0x26c   : > { %v597_v17 = vadd.f32 %v1026_v13, %v509_v7  ;;  %v591_v18 = vpop.f32.mrb[1].mxu1 }
 0x26d   : > { %v592_v20 = vadd.f32 %v591_v18, %v508_v15 }
 0x26e   : > { %v678_v19 = vadd.f32 %v674_v14, %v597_v17 }
 0x26f   : > { %v1029_v28 = vpop.f32.mrb[2].mxu1  ;;  %v677_v34 = vadd.f32 %v673_v24, %v592_v20 }
 0x270   : > { %688 = vperm.xlu1 %1084, %v678_v19   ;;  %v601_v32 = vpop.f32.mrb[3].mxu1  ;;  %v607_v43 = vadd.f32 %v1029_v28, %v511_v36 }
 0x271   : > { %v602_v35 = vadd.f32 %v601_v32, %v510_v31 }
 0x272   : > { %v680_v51 = vadd.f32 %v676_v47, %v607_v43 }
 0x273   : > { %v658_v38 = vpop.f32.mrb[4].mxu1  ;;  %v679_v44 = vadd.f32 %v675_v37, %v602_v35 }
 0x274   : > { %v659_v39 = vadd.f32 %v658_v38, %v619_v33  ;;  %v660_v40 = vpop.f32.mrb[5].mxu1  ;;  %683 = vperm.xlu1 %1084, %v677_v34  }
 0x275   : > { %v661_v41 = vadd.f32 %v660_v40, %v619_v33  ;;  %v662_v42 = vpop.f32.mrb[6].mxu1 }
 0x276   : > { %v665_v45 = vmax.f32 %v659_v39, 0.0  ;;  %v663_v46 = vpop.f32.mrb[7].mxu1 }
 0x277   : > { %v666_v48 = vmax.f32 %v661_v41, 0.0 }
 0x278   : > { %v671_v49 = vpack.c.bf16 %v665_v45, %v665_v45  ;;  %693 = vperm.xlu1 %1084, %v679_v44  }
 0x279   : > { %v672_v50 = vpack.c.bf16 %v666_v48, %v666_v48 }
 0x27a   : > { %v719_v52 = vsel %vm717_vm3, %v671_v49, 0 }
 0x27b   : > { %982 = vmatprep.subr.msk.bf16.mxu0 %vm717_vm3, %v672_v50  ;;  %1036 = vmatprep.subr.msk.bf16.mxu1 %vm717_vm3, %v672_v50 }
 0x27c   : > { %698 = vperm.xlu1 %1084, %v680_v51   ;;  %725 = vmatpush1.bf16.msra.mxu0 %v719_v52 }
 0x27d   : > { %1037 = vmatpush1.bf16.msra.mxu1 %v719_v52 }
 0x27f   : > { %983 = vmatmul.mubr.msk.bf16.vlgmr.msra.gmra.mrb[4].mxu0 %vm512_vm2, %v1085_v53 }
 0x280   : > { %984 = vmatmul.mubr.msk.bf16.vlgmr.msra.gmra.mrb[8].mxu1 %vm512_vm2, %v1086_v54 }
 0x2ef   : > { %v689_v55 = vpop.permute.xlu1 %688 }
 0x2f3   : > { %v684_v56 = vpop.permute.xlu1 %683 }
 0x2f7   : > { %v694_v57 = vpop.permute.xlu1 %693 }
 0x2fb   : > { %v699_v58 = vpop.permute.xlu1 %698 }
 0x352   : > { %v758_v59 = vpop.f32.mrb[4].mxu0 }
 0x353   : > { %v759_v60 = vadd.f32 %v758_v59, %v684_v56  ;;  %v768_v61 = vpop.f32.mrb[8].mxu1  ;;  %v760_v62 = vpop.f32.mrb[5].mxu0 }
 0x354   : > { %v769_v63 = vadd.f32 %v768_v61, %v694_v57  ;;  %v761_v1 = vadd.f32 %v760_v62, %v684_v56  ;;  %v770_v7 = vpop.f32.mrb[9].mxu1  ;;  %v762_v13 = vpop.f32.mrb[6].mxu0 }
 0x355   : > { %v777_v14 = vsub.f32 0.0, %v759_v60  ;;  %v771_v15 = vadd.f32 %v770_v7, %v694_v57  ;;  %v763_v17 = vadd.f32 %v762_v13, %v689_v55  ;;  %v772_v18 = vpop.f32.mrb[10].mxu1  ;;  %v764_v19 = vpop.f32.mrb[7].mxu0  ;;  %v818_v7 = vsub.f32 %v384_v9, %v1315_v11 }
 0x356   : > { %v781_v20 = vsub.f32 0.0, %v769_v63  ;;  %v778_v24 = vsub.f32 0.0, %v761_v1  ;;  %v773_v28 = vadd.f32 %v772_v18, %v699_v58  ;;  %v765_v31 = vadd.f32 %v764_v19, %v689_v55  ;;  %v774_v32 = vpop.f32.mrb[11].mxu1 }
 0x357   : > { %v785_v33 = vmul.f32 1.442695, %v777_v14  ;;  %v782_v34 = vsub.f32 0.0, %v771_v15  ;;  %v779_v35 = vsub.f32 0.0, %v763_v17  ;;  %v775_v36 = vadd.f32 %v774_v32, %v699_v58 }
 0x358   : > { %v793_v37 = vmul.f32 1.442695, %v781_v20  ;;  %v787_v38 = vmul.f32 1.442695, %v778_v24  ;;  %v783_v39 = vsub.f32 0.0, %v773_v28  ;;  %v780_v40 = vsub.f32 0.0, %v765_v31 }
 0x359   : > { %1087 = vpow2.f32 %v785_v33  ;;  %v795_v41 = vmul.f32 1.442695, %v782_v34  ;;  %v789_v42 = vmul.f32 1.442695, %v779_v35  ;;  %v784_v43 = vsub.f32 0.0, %v775_v36 }
 0x35a   : > { %1089 = vpow2.f32 %v793_v37  ;;  %v797_v44 = vmul.f32 1.442695, %v783_v39  ;;  %v791_v45 = vmul.f32 1.442695, %v780_v40  ;;  %v817_v63 = vsub.f32 %v383_v8, %v1313_v10 }
 0x35b   : > { %1091 = vpow2.f32 %v787_v38  ;;  %v799_v46 = vmul.f32 1.442695, %v784_v43  ;;  %v821_v1 = vsub.f32 %v387_v3, %v1307_v5  ;;  %v822_v14 = vsub.f32 %v388_v4, %v1309_v6 }
 0x35c   : > { %1093 = vpow2.f32 %v795_v41  ;;  %v819_v8 = vsub.f32 %v385_v26, %v1356_v29  ;;  %v823_v3 = vsub.f32 %v389_v21, %v1345_v23  ;;  %v824_v26 = vsub.f32 %v390_v22, %v1349_v25 }
 0x35d   : > { %1095 = vpow2.f32 %v789_v42 }
 0x35e   : > { %1097 = vpow2.f32 %v797_v44 }
 0x35f   : > { %1099 = vpow2.f32 %v791_v45 }
 0x360   : > { %1101 = vpow2.f32 %v799_v46 }
 0x363   : > { %v1088_v47 = vpop.eup %1087 }
 0x364   : > { %v1090_v48 = vpop.eup %1089  ;;  %v801_v49 = vadd.f32 1.0, %v1088_v47 }
 0x365   : > { %v1092_v50 = vpop.eup %1091  ;;  %v805_v51 = vadd.f32 1.0, %v1090_v48 }
 0x366   : > { %v1094_v52 = vpop.eup %1093  ;;  %1103 = vrcp.f32 %v801_v49  ;;  %v802_v53 = vadd.f32 1.0, %v1092_v50 }
 0x367   : > { %v1096_v54 = vpop.eup %1095  ;;  %1105 = vrcp.f32 %v805_v51  ;;  %v806_v55 = vadd.f32 1.0, %v1094_v52 }
 0x368   : > { %v1098_v56 = vpop.eup %1097  ;;  %1107 = vrcp.f32 %v802_v53  ;;  %v803_v57 = vadd.f32 1.0, %v1096_v54 }
 0x369   : > { %v1100_v58 = vpop.eup %1099  ;;  %1109 = vrcp.f32 %v806_v55  ;;  %v807_v59 = vadd.f32 1.0, %v1098_v56 }
 0x36a   : > { %v1102_v60 = vpop.eup %1101  ;;  %1111 = vrcp.f32 %v803_v57  ;;  %v804_v61 = vadd.f32 1.0, %v1100_v58 }
 0x36b   : > { %1113 = vrcp.f32 %v807_v59  ;;  %v808_v62 = vadd.f32 1.0, %v1102_v60 }
 0x36c   : > { %1115 = vrcp.f32 %v804_v61 }
 0x36d   : > { %1117 = vrcp.f32 %v808_v62 }
 0x370   : > { %v1104_v13 = vpop.eup %1103 }
 0x371   : > { %v1106_v15 = vpop.eup %1105  ;;  %v825_v17 = vmul.f32 %v1104_v13, %v817_v63 }
 0x372   : > { %v1108_v18 = vpop.eup %1107  ;;  %v829_v2 = vmul.f32 %v1106_v15, %v821_v1 }
 0x373   : > { %v1110_v9 = vpop.eup %1109  ;;  %v833_v4 = vadd.f32 %v825_v17, %v1313_v10  ;;  %v826_v19 = vmul.f32 %v1108_v18, %v818_v7 }
 0x374   : > { %v1112_v20 = vpop.eup %1111  ;;  %v837_v24 = vadd.f32 %v829_v2, %v1307_v5  ;;  %v830_v28 = vmul.f32 %v1110_v9, %v822_v14 }
 0x375   : > { %v1114_v21 = vpop.eup %1113  ;;  %v841_v31 = vmul.f32 2.0, %v833_v4  ;;  %v834_v32 = vadd.f32 %v826_v19, %v1315_v11  ;;  %v827_v33 = vmul.f32 %v1112_v20, %v819_v8 }
 0x376   : > { %v1116_v16 = vpop.eup %1115  ;;  %v845_v27 = vmul.f32 2.0, %v837_v24  ;;  %v838_v10 = vadd.f32 %v830_v28, %v1309_v6  ;;  %v831_v34 = vmul.f32 %v1114_v21, %v823_v3 }
 0x377   : > { %v1118_v35 = vpop.eup %1117  ;;  %v842_v36 = vmul.f32 2.0, %v834_v32  ;;  %v835_v12 = vadd.f32 %v827_v33, %v1356_v29  ;;  %v828_v22 = vmul.f32 %v1116_v16, %v820_v0 }
 0x378   : > { %v846_v5 = vmul.f32 2.0, %v838_v10  ;;  %v839_v37 = vadd.f32 %v831_v34, %v1345_v23  ;;  %v832_v38 = vmul.f32 %v1118_v35, %v824_v26 }
 0x379   : > { %v996_v39 = vpack.c.bf16 %v842_v36, %v841_v31  ;;  %v843_v40 = vmul.f32 2.0, %v835_v12  ;;  %v836_v11 = vadd.f32 %v828_v22, %v1358_v30 }
 0x37a   : > { %v998_v41 = vpack.c.bf16 %v846_v5, %v845_v27  ;;  %v847_v42 = vmul.f32 2.0, %v839_v37  ;;  %v840_v43 = vadd.f32 %v832_v38, %v1349_v25 }
 0x37b   : > { %v844_v6 = vmul.f32 2.0, %v836_v11  ;;  %873 = vst [vmem:[%s367_s28] sm:$0xff] %v996_v39 }
 0x37c   : > { %v848_v29 = vmul.f32 2.0, %v840_v43  ;;  %875 = vst [vmem:[%s367_s28 + $0x10] sm:$0xff] %v998_v41 }
 0x37d   : > { %v997_v44 = vpack.c.bf16 %v844_v6, %v843_v40 }
 0x37e   : > { %v999_v23 = vpack.c.bf16 %v848_v29, %v847_v42 }
 0x37f   : > { %874 = vst [vmem:[%s367_s28 + $0x8] sm:$0xff] %v997_v44 }
 0x380   : > { %876 = vst [vmem:[%s367_s28 + $0x18] sm:$0xff] %v999_v23 }
 0x381   : > { %1132 = shalt.err (!%p1129_p3)
}
 0x382   : > { %s1133_s25 = scalar_lea.hbm %s1474_s12, 512  ;;  %s1137_s30 = scalar_lea.hbm %s1531_s10, 1024 }
 0x383   : > { %p1134_p4 = scmp.ne.s32.totalorder %s1474_s12, %s1133_s25  ;;  %p1138_p9 = scmp.lt.u32.totalorder %s1474_s12, %s1531_s10 }
 0x384   : > { %p1139_p10 = scmp.lt.u32.totalorder %s1137_s30, %s1133_s25  ;;  %p1141_p12 = scmp.lt.u32.totalorder %s1133_s25, %s1474_s12 }
 0x385   : > { %p1135_p7 = pnand %p1134_p4, %p1283_p5 }
 0x386   : > { %p1140_p11 = por %p1139_p10, %p1138_p9 }
 0x387   : > { %p1136_p8 = pneg %p1135_p7 }
 0x388   : > { %p1142_p13 = por %p1141_p12, %p1140_p11 }
 0x38a   : > { %p1143_p0 = pnand %p1142_p13, %p1136_p8 }
 0x38c   : > { %1146 = shalt.err (!%p1143_p0)
}
 0x38d   : > { %s1188_s18 = smov 128   ;;  %s1189_s21 = smov 8  }
 0x38e   : > { %1038 = dma.vmem_to_hbm [thread:$0]  (%p1283_p5), %s1476_s29, 512, %s1474_s12, %s1480_s17, %s1188_s18, %s1188_s18, %s1189_s21  }
 0x38f PF: > { %p1044_p1 = scmp.ge.s32.totalorder %s1181_s16, 2  ;;  %s906_s26 = sand.u32 1, %s1169_s13  }
 0x390   : > { %s907_s25 = scalar_lea.sflag [#allocation3], %s906_s26 }
 0x391   : > { %p1041_p2 = pnand %p1044_p1, %p1287_p6 }
 0x393   : > { %1164 = dma.done.wait (!%p1041_p2), %s907_s25, 512  }
 0x394   : > { %1166 = vsyncadd (!%p1041_p2), %s907_s25, 4294966784  ;;  %p20_p3 = scmp.ge.s32.totalorder %s1270_s19, 4   ;;  %s1534_s13 = smov %s1173_s14 }
 0x395   : > { %s1535_s14 = smov %s1177_s15  ;;  %s1536_s15 = smov %s1281_s22 }
 0x396   : > { %s1537_s16 = smov %s1270_s19  ;;  %22 = sbr.rel (!%p20_p3) target bundleno = 3 (0x3), region = 98 }
 0x39d   :  { %912 = vsyncpa [#allocation3], 1 }
 0x39e   :  { %914 = vsyncpa [#allocation3 + $0x1], 1 }

</bundles_post_ra>
